<compile_context>
chip_gen: v7x
topology: tpu7x:2x2x1
jax: 0.10.0
libtpu: 0.0.40
codegen_flags: <defaults>
</compile_context>

<pallas_src>
import jax
import jax.numpy as jnp
from jax import lax
from jax.experimental import pallas as pl
from jax.experimental.pallas import tpu as pltpu

_LANE = 128
_MAX_BLOCK_BYTES = 8 * 1024 * 1024   # per-block budget; x2 (double-buffered) = 16 MiB


def _make_kernel(sub, t_groups, rem_groups):
    """Per-tile partial-sum kernel factory.

    Input block: (t_groups, sub, 128).  Accumulates sum(p * (1 - p)) over the
    statically-known number of valid groups in this tile and writes one
    (8, 128) f32 partial-sum row-group.
    """
    # Groups per fori_loop step: ~8 f32 vregs of work per iteration, keeps
    # live vregs well under the 64-vreg file (no spills).
    chunk = max(1, min(t_groups, 64 // sub))

    def kernel(p_ref, out_ref):
        def chunk_sum(g0, ng):
            p = p_ref[pl.ds(g0, ng), :, :].astype(jnp.float32)   # (ng, sub, 128)
            v = p * (1.0 - p)                                    # == (1-(p^2+(p-1)^2))/2
            return jnp.sum(v, axis=0)                            # leading-axis only -> VPU

        def tile_sum(n_groups):
            n_chunks = n_groups // chunk                         # static
            acc = jnp.zeros((sub, _LANE), jnp.float32)
            if n_chunks > 0:
                def body(c, a):
                    g0 = pl.multiple_of(c * chunk, chunk)
                    return a + chunk_sum(g0, chunk)
                acc = lax.fori_loop(0, n_chunks, body, acc)
            left = n_groups - n_chunks * chunk                   # static
            if left:
                acc = acc + chunk_sum(n_chunks * chunk, left)
            # Fold sublane-packed groups (bf16/int8) down to one f32 row-group.
            return jnp.sum(acc.reshape(sub // 8, 8, _LANE), axis=0)   # (8, 128)

        if rem_groups == t_groups:
            # Every tile is full (static) — single hot path, no masking work.
            out_ref[...] = tile_sum(t_groups)
        else:
            # Only the last tile is partial; it simply loops over fewer groups
            # (the clamped-DMA garbage region is never read).
            i = pl.program_id(0)
            last = pl.num_programs(0) - 1

            @pl.when(i != last)
            def _():
                out_ref[...] = tile_sum(t_groups)

            @pl.when(i == last)
            def _():
                out_ref[...] = tile_sum(rem_groups)

    return kernel


def thrreg_loss(pred, gt=None):
    """Pallas TPU implementation of ThrReg_loss.forward.

    Returns a float32 scalar equal to mean(1 - ((pred - 0)**2 + (pred - 1)**2)).
    `gt` is unused (as in the PyTorch module).
    """
    del gt
    total = int(pred.size)
    if total == 0:
        return jnp.float32(jnp.nan)   # torch.mean of an empty tensor is NaN

    itemsize = jnp.dtype(pred.dtype).itemsize
    sub = max(8, 32 // itemsize)      # sublanes per vreg: 8 f32 / 16 bf16 / 32 int8
    group = sub * _LANE               # elements per (sub, 128) row-group (4 KiB)

    x = pred.reshape(-1)
    n_groups = total // group
    aligned = n_groups * group

    kernel_sum = jnp.float32(0.0)
    if n_groups > 0:
        # Zero-copy when `total` is group-aligned (full slice + bitcast reshape).
        body3d = x[:aligned].reshape(n_groups, sub, _LANE)

        group_bytes = group * itemsize
        max_groups = max(1, _MAX_BLOCK_BYTES // group_bytes)
        if n_groups <= 32:
            t_groups = n_groups                     # tiny input: one full-extent block
        elif n_groups <= 2 * max_groups:
            t_groups = pl.cdiv(n_groups, 2)         # exactly 2 tiles: feeds both v7x TCs
        else:
            t_groups = max_groups                   # ~8 MiB blocks for large inputs
        num_tiles = pl.cdiv(n_groups, t_groups)
        rem_groups = n_groups - (num_tiles - 1) * t_groups   # groups in last tile

        partials = pl.pallas_call(
            _make_kernel(sub, t_groups, rem_groups),
            out_shape=jax.ShapeDtypeStruct((num_tiles * 8, _LANE), jnp.float32),
            grid_spec=pl.GridSpec(
                grid=(num_tiles,),
                in_specs=[pl.BlockSpec((t_groups, sub, _LANE), lambda i: (i, 0, 0))],
                out_specs=pl.BlockSpec((8, _LANE), lambda i: (i, 0)),
            ),
            compiler_params=pltpu.CompilerParams(
                dimension_semantics=("parallel",),      # independent per-tile outputs
                vmem_limit_bytes=32 * 1024 * 1024,      # 2 x 8 MiB blocks + headroom
            ),
            cost_estimate=pl.CostEstimate(
                flops=3 * aligned,
                transcendentals=0,
                bytes_accessed=aligned * itemsize + num_tiles * 8 * _LANE * 4,
            ),
        )(body3d)
        kernel_sum = jnp.sum(partials, dtype=jnp.float32)

    # Sub-group tail (< sub*128 elements) handled in plain JAX — no padding copies.
    if aligned < total:
        tail = x[aligned:].astype(jnp.float32)
        tail_sum = jnp.sum(tail * (1.0 - tail))
    else:
        tail_sum = jnp.float32(0.0)

    # mean(1 - (p^2 + (p-1)^2)) == 2 * sum(p * (1 - p)) / N
    return 2.0 * (kernel_sum + tail_sum) / jnp.float32(total)


def _thrreg_loss_ref(pred):
    """Pure-JAX reference matching the literal PyTorch form."""
    return jnp.mean(1.0 - ((pred - 0.0) ** 2 + (pred - 1.0) ** 2))


if __name__ == "__main__":
    key = jax.random.PRNGKey(0)
    k0, k1, k2 = jax.random.split(key, 3)

    # Primary test: module-typical shape (B, C, H, W), f32, fully aligned.
    B, C, H, W = 2, 4, 16, 16
    pred = jax.nn.sigmoid(jax.random.normal(k0, (B, C, H, W), dtype=jnp.float32))
    out = jax.block_until_ready(thrreg_loss(pred))
    ref = _thrreg_loss_ref(pred)
    assert jnp.allclose(out, ref, rtol=1e-5, atol=1e-5), (out, ref)

    # Awkward f32 shape: exercises the 2-tile grid, the partial last tile and
    # the plain-JAX tail (35865 elems -> 35 groups + 25-element tail).
    pred2 = jax.nn.sigmoid(jax.random.normal(k1, (5, 7173), dtype=jnp.float32))
    out2 = jax.block_until_ready(thrreg_loss(pred2))
    ref2 = _thrreg_loss_ref(pred2)
    assert jnp.allclose(out2, ref2, rtol=1e-5, atol=1e-5), (out2, ref2)

    # bf16 input: exercises the 16-sublane packing + in-kernel f32 upcast.
    pred3 = jax.nn.sigmoid(jax.random.normal(k2, (4, 8, 32, 32))).astype(jnp.bfloat16)
    out3 = jax.block_until_ready(thrreg_loss(pred3))
    ref3 = _thrreg_loss_ref(pred3.astype(jnp.float32))
    assert jnp.allclose(out3, ref3, rtol=1e-4, atol=1e-4), (out3, ref3)

    print("KERNEL_OK")
</pallas_src>

<mosaic_0001>
module attributes {stable_mosaic.version = 11 : i64} {
  func.func @kernel(%arg0: i32, %arg1: memref<2x8x128xf32, #tpu.memory_space<vmem>>, %arg2: memref<8x128xf32, #tpu.memory_space<vmem>>) attributes {dimension_semantics = [#tpu.dimension_semantics<parallel>], iteration_bounds = array<i64: 1>, scalar_prefetch = 0 : i64, scratch_operands = 0 : i64, tpu.core_type = #tpu.core_type<tc>, window_params = [{transform_indices = @transform_0, window_bounds = array<i64: 2, 8, 128>}, {transform_indices = @transform_1, window_bounds = array<i64: 8, 128>}]} {
    %cst = arith.constant 0.000000e+00 : f32
    %0 = vector.broadcast %cst : f32 to vector<8x128xf32>
    %c0_i32 = arith.constant 0 : i32
    %c2_i32 = arith.constant 2 : i32
    %1 = arith.muli %c0_i32, %c2_i32 : i32
    %2 = tpu.assume_multiple %1, 2 : i32
    %3 = arith.index_cast %2 : i32 to index
    %c0 = arith.constant 0 : index
    %c0_0 = arith.constant 0 : index
    %4 = vector.load %arg1[%3, %c0, %c0_0] : memref<2x8x128xf32, #tpu.memory_space<vmem>>, vector<2x8x128xf32>
    %cst_1 = arith.constant 1.000000e+00 : f32
    %5 = vector.broadcast %cst_1 : f32 to vector<2x8x128xf32>
    %6 = arith.subf %5, %4 : vector<2x8x128xf32>
    %7 = arith.mulf %4, %6 : vector<2x8x128xf32>
    %cst_2 = arith.constant dense<0.000000e+00> : vector<8x128xf32>
    %8 = vector.multi_reduction <add>, %7, %cst_2 [0] : vector<2x8x128xf32> to vector<8x128xf32>
    %9 = arith.addf %0, %8 : vector<8x128xf32>
    %c1_i32 = arith.constant 1 : i32
    %10 = vector.shape_cast %9 : vector<8x128xf32> to vector<1x8x128xf32>
    %cst_3 = arith.constant dense<0.000000e+00> : vector<8x128xf32>
    %11 = vector.multi_reduction <add>, %10, %cst_3 [0] : vector<1x8x128xf32> to vector<8x128xf32>
    %c0_4 = arith.constant 0 : index
    %c0_5 = arith.constant 0 : index
    %12 = vector.load %arg2[%c0_4, %c0_5] : memref<8x128xf32, #tpu.memory_space<vmem>>, vector<8x128xf32>
    tpu.vector_store %arg2[%c0_4, %c0_5], %11 {strides = array<i32>} : memref<8x128xf32, #tpu.memory_space<vmem>>, vector<8x128xf32>,
    return
  }
  func.func @transform_0(%arg0: i32) -> (i32, i32, i32) {
    %c0_i32 = arith.constant 0 : i32
    %c0_i32_0 = arith.constant 0 : i32
    %c0_i32_1 = arith.constant 0 : i32
    return %arg0, %c0_i32, %c0_i32_0 : i32, i32, i32
  }
  func.func @transform_1(%arg0: i32) -> (i32, i32) {
    %c0_i32 = arith.constant 0 : i32
    %c0_i32_0 = arith.constant 0 : i32
    return %arg0, %c0_i32 : i32, i32
  }
}

</mosaic_0001>

<bundles_post_ra>
// kernel: tpu_custom_call.1
= control target key start
LH: loop header
LB: loop body
LE: loop exit
PB: predicated region body
PF: predicated region fallthrough
CT: control target
= control target key end

     0   :  { %6 = vsyncpa [#allocation3], 0  ;;  %s140_s0 = inlined_call_operand.hbm [shape: f32[2,8,128], index: 0, kind: input, shape index: {}]   ;;  %s141_s1 = inlined_call_operand.hbm [shape: f32[8,128], index: 1, kind: output, shape index: {}]  }
   0x1   :  { %7 = vsyncpa [#allocation4], 0  ;;  %s102_s6 = smov [#allocation2]   ;;  %s54_s10 = scalar_lea.hbm %s140_s0, 256 }
   0x2   :  { %s13_s7 = sshll.u32 %s102_s6, 4  ;;  %p55_p0 = scmp.ne.s32.totalorder %s140_s0, %s54_s10  ;;  %s14_s7 = int_to_ptr.vmem [resolvable:$true] %s13_s7 }
   0x3   :  { %p58_p1 = scmp.lt.u32.totalorder %s54_s10, %s140_s0 }
   0x5   :  { %p60_p2 = pnand %p58_p1, %p55_p0 }
   0x7   :  { %63 = shalt.err (!%p60_p2)
}
   0x8   :  { %s64_s15 = scalar_lea.vmem %s14_s7, 256  ;;  %p69_p4 = scmp.lt.s32.totalorder %s14_s7, %s14_s7 }
   0x9   :  { %p65_p3 = scmp.ne.s32.totalorder %s14_s7, %s64_s15  ;;  %p70_p5 = scmp.lt.s32.totalorder %s64_s15, %s64_s15 }
   0xb   :  { %p71_p6 = por %p70_p5, %p69_p4 }
   0xd   :  { %p72_p7 = pnand %p71_p6, %p65_p3 }
   0xf   :  { %75 = shalt.err (!%p72_p7)
}
  0x10   :  { %s103_s16 = smov 128   ;;  %s104_s17 = smov 8  }
  0x11   :  { %19 = dma.hbm_to_vmem [thread:$0]  %s140_s0, 256, %s14_s7, [#allocation3], %s103_s16, %s103_s16, %s104_s17  }
  0x12   :  { %98 = dma.done.wait [#allocation3], 256  }
  0x13   :  { %99 = vsyncadd [#allocation3], 4294967040  ;;  %v25_v0 = vld [vmem:[#allocation2] sm:$0xff]  ;;  %v26_v1 = vld [vmem:[#allocation2 + $0x8] sm:$0xff]  ;;  %s105_s20 = smov [#allocation5]  }
  0x14   :  { %v27_v2 = vsub.f32 1.0, %v25_v0  ;;  %v28_v3 = vsub.f32 1.0, %v26_v1  ;;  %s41_s21 = sshll.u32 %s105_s20, 4  ;;  %s42_s21 = int_to_ptr.vmem [resolvable:$true] %s41_s21 }
  0x15   :  { %s76_s22 = scalar_lea.vmem %s42_s21, 128  ;;  %p81_p9 = scmp.lt.s32.totalorder %s42_s21, %s42_s21 }
  0x16   :  { %v29_v4 = vmul.f32 %v27_v2, %v25_v0  ;;  %v30_v5 = vmul.f32 %v28_v3, %v26_v1  ;;  %p77_p8 = scmp.ne.s32.totalorder %s42_s21, %s76_s22  ;;  %p82_p10 = scmp.lt.s32.totalorder %s76_s22, %s76_s22 }
  0x18   :  { %v31_v6 = vadd.f32 %v30_v5, %v29_v4  ;;  %p83_p11 = por %p82_p10, %p81_p9 }
  0x1a   :  { %34 = vst [vmem:[#allocation5] sm:$0xff] %v31_v6  ;;  %p84_p12 = pnand %p83_p11, %p77_p8 }
  0x1c   :  { %87 = shalt.err (!%p84_p12)
}
  0x1d   :  { %s88_s24 = scalar_lea.hbm %s141_s1, 128 }
  0x1e   :  { %p89_p13 = scmp.ne.s32.totalorder %s141_s1, %s88_s24  ;;  %p92_p0 = scmp.lt.u32.totalorder %s88_s24, %s141_s1 }
  0x20   :  { %p94_p1 = pnand %p92_p0, %p89_p13 }
  0x22   :  { %97 = shalt.err (!%p94_p1)
}
  0x23   :  { %44 = dma.vmem_to_hbm [thread:$0]  %s42_s21, 128, %s141_s1, [#allocation4]  }
  0x24   :  { %100 = dma.done.wait [#allocation4], 128  }
  0x25   :  { %101 = vsyncadd [#allocation4], 4294967168 }
  0x26   :  { %48 = vsyncpa [#allocation3], 1 }
  0x27   :  { %49 = vsyncpa [#allocation4], 1 }

</bundles_post_ra>
